<compile_context>
chip_gen: v5e
topology: v5e:2x2
jax: 0.10.0
libtpu: 0.0.40
codegen_flags: <defaults>
</compile_context>

<pallas_src>
import functools

import jax
import jax.numpy as jnp
from jax.experimental import pallas as pl
from jax.experimental.pallas import tpu as pltpu


# ----------------------------------------------------------------------------
# Pallas kernel: fused (patches @ W) + bias, f32 accumulate, cast on store
# ----------------------------------------------------------------------------

def _patch_embed_kernel(x_ref, w_ref, b_ref, o_ref):
    acc = jnp.dot(x_ref[...], w_ref[...], preferred_element_type=jnp.float32)
    o_ref[...] = (acc + b_ref[...]).astype(o_ref.dtype)


def _round_up(x, m):
    return ((x + m - 1) // m) * m


def _resident_spec(shape):
    """BlockSpec for a grid-invariant operand: single-buffered (halves VMEM)."""
    index_map = lambda i: (0,) * len(shape)
    if hasattr(pl, "Buffered"):
        return pl.BlockSpec(shape, index_map, pipeline_mode=pl.Buffered(1))
    return pl.BlockSpec(shape, index_map)


def _choose_tm(M, Kp, Np, out_itemsize, *, max_tm=512, min_tiles=4,
               vmem_budget_bytes=12 * 1024 * 1024):
    """Pick the row-tile size.

    Budget-aware (stays under v5e's 16 MiB scoped-VMEM default -> no
    vmem_limit_bytes needed, and well under v7x's 64 MiB physical VMEM),
    targets >= min_tiles tiles for large M (2 per TensorCore on v7x), and
    prefers an exact divisor of M when one is nearby (no partial edge tile).
    """
    def footprint(tm):
        x_bytes = 2 * tm * Kp * 2                 # bf16 input, double-buffered
        o_bytes = 2 * tm * Np * out_itemsize      # output, double-buffered
        w_bytes = Kp * Np * 2                     # bf16 weight, single-buffered
        b_bytes = Np * 4                          # f32 bias, single-buffered
        return x_bytes + o_bytes + w_bytes + b_bytes

    if M <= max_tm and footprint(M) <= vmem_budget_bytes:
        return M                                  # one full-M block

    tm = min(max_tm, _round_up(pl.cdiv(M, min_tiles), 16), _round_up(M, 16))
    while tm > 16 and footprint(tm) > vmem_budget_bytes:
        tm -= 16
    tm = max(tm, 16)
    # Prefer a nearby exact divisor of M (avoids a partially-wasted edge tile).
    for cand in range(tm, max(16, tm - 112) - 1, -16):
        if M % cand == 0:
            return cand
    return tm


def patch_embed_matmul(patches, w, b, *, out_dtype=jnp.bfloat16, max_tm=512):
    """patches: [M, Kp] bf16, w: [Kp, Np] bf16, b: [1, Np] f32 -> [M, Np]."""
    M, Kp = patches.shape
    Kp_w, Np = w.shape
    assert Kp == Kp_w, (Kp, Kp_w)
    out_itemsize = jnp.dtype(out_dtype).itemsize

    tm = _choose_tm(M, Kp, Np, out_itemsize, max_tm=max_tm)
    grid = (pl.cdiv(M, tm),)

    cost = pl.CostEstimate(
        flops=2 * M * Kp * Np,
        transcendentals=0,
        bytes_accessed=M * Kp * 2 + Kp * Np * 2 + Np * 4 + M * Np * out_itemsize,
    )

    return pl.pallas_call(
        _patch_embed_kernel,
        out_shape=jax.ShapeDtypeStruct((M, Np), out_dtype),
        grid=grid,
        in_specs=[
            pl.BlockSpec((tm, Kp), lambda i: (i, 0)),   # activations: tiled rows
            _resident_spec((Kp, Np)),                   # weight: grid-invariant
            _resident_spec((1, Np)),                    # bias:   grid-invariant
        ],
        out_specs=pl.BlockSpec((tm, Np), lambda i: (i, 0)),
        compiler_params=pltpu.CompilerParams(
            dimension_semantics=("parallel",)),
        cost_estimate=cost,
    )(patches, w, b)


# ----------------------------------------------------------------------------
# Parameter prep (done ONCE): PyTorch Conv2d [D, C, P, P] -> padded bf16 matmul
# ----------------------------------------------------------------------------

def prepare_encoder_params(w_conv, b_conv, *, k_align=256, n_align=128):
    """Pre-cast/pre-pad the projection so no per-call weight passes are needed.

    w_conv: [D, C, P, P] (PyTorch OIHW), b_conv: [D].
    Returns {'w': [Kp, Np] bf16, 'b': [1, Np] f32} with K padded to k_align
    (MXU contraction alignment on v6e/v7x) and N padded to n_align lanes.
    """
    D, C, P, P2 = w_conv.shape
    assert P == P2
    K = C * P * P
    Kp = _round_up(K, k_align)
    Np = _round_up(D, n_align)

    w = jnp.asarray(w_conv, jnp.float32).reshape(D, K).T          # [K, D]
    if (Kp, Np) != (K, D):
        w = jnp.pad(w, ((0, Kp - K), (0, Np - D)))
    b = jnp.asarray(b_conv, jnp.float32)
    if Np != D:
        b = jnp.pad(b, ((0, Np - D),))

    return {"w": w.astype(jnp.bfloat16),
            "b": b.reshape(1, Np).astype(jnp.float32)}


# ----------------------------------------------------------------------------
# EncoderBlock forward (hybrid=False)
# ----------------------------------------------------------------------------

def encoder_block_forward(params, x, *, patch_size, hidden_size=None,
                          channels_last=False, out_dtype=jnp.bfloat16):
    """x: [B, C, H, W] (NCHW).  Returns (embeddings, features).

    embeddings: [B, hidden, H/P, W/P] NCHW (or [B, H/P, W/P, hidden] if
    channels_last=True); features: None (hybrid=False).
    """
    B, C, H, W = x.shape
    P = patch_size
    hp, wp = H // P, W // P
    K = C * P * P
    Kp, Np = params["w"].shape
    D = Np if hidden_size is None else hidden_size

    # Cast to bf16 FIRST so the (pure layout) patch extraction and the kernel's
    # input DMA move half the bytes.  Patch vector ordering is (cin, kh, kw),
    # matching PyTorch Conv2d weight layout.
    xb = x.astype(jnp.bfloat16)
    patches = xb.reshape(B, C, hp, P, wp, P)
    patches = patches.transpose(0, 2, 4, 1, 3, 5).reshape(B * hp * wp, K)
    if Kp != K:
        # Zero K-pad (weight pad rows are zero too, so the dot is exact).
        patches = jnp.pad(patches, ((0, 0), (0, Kp - K)))

    tok = patch_embed_matmul(patches, params["w"], params["b"],
                             out_dtype=out_dtype)                 # [M, Np]

    if D != Np:
        tok = tok[:, :D]
    tok = tok.reshape(B, hp, wp, D)
    if not channels_last:
        tok = tok.transpose(0, 3, 1, 2)   # exact PyTorch NCHW output layout

    # PatchEmbed.norm = Identity; EncoderBlock.dropout = identity at inference.
    features = None                       # hybrid=False
    return tok, features


# ----------------------------------------------------------------------------
# Demo / self-check
# ----------------------------------------------------------------------------

if __name__ == "__main__":
    B, C, IMG, P, D = 2, 3, 64, 16, 128   # small shapes consistent with the module

    key = jax.random.PRNGKey(0)
    k1, k2, k3 = jax.random.split(key, 3)
    x = jax.random.normal(k1, (B, C, IMG, IMG), jnp.float32)
    # PyTorch Conv2d layout: weight [D, C, P, P], bias [D].
    w_torch = 0.05 * jax.random.normal(k2, (D, C, P, P), jnp.float32)
    b_torch = 0.05 * jax.random.normal(k3, (D,), jnp.float32)

    # Weights pre-cast/pre-padded ONCE (not inside the jitted forward).
    params = prepare_encoder_params(w_torch, b_torch)

    fwd = jax.jit(functools.partial(encoder_block_forward,
                                    patch_size=P, hidden_size=D))
    out, feats = fwd(params, x)
    jax.block_until_ready(out)

    assert out.shape == (B, D, IMG // P, IMG // P), out.shape
    assert out.dtype == jnp.bfloat16, out.dtype
    assert feats is None
    assert bool(jnp.all(jnp.isfinite(out.astype(jnp.float32))))

    # Numerical check against the exact f32 convolution (bf16 MXU operands and
    # bf16 output introduce only small rounding error; accumulation is f32).
    ref = jax.lax.conv_general_dilated(
        x, w_torch, window_strides=(P, P), padding="VALID",
        dimension_numbers=("NCHW", "OIHW", "NCHW"),
        precision=jax.lax.Precision.HIGHEST) + b_torch.reshape(1, D, 1, 1)
    max_err = float(jnp.max(jnp.abs(out.astype(jnp.float32) - ref)))
    scale = float(jnp.max(jnp.abs(ref))) + 1e-6
    assert max_err <= 0.05 * scale, (max_err, scale)

    print("KERNEL_OK")
</pallas_src>

<mosaic_0001>
module attributes {stable_mosaic.version = 11 : i64} {
  func.func @_patch_embed_kernel(%arg0: i32, %arg1: memref<32x768xbf16, #tpu.memory_space<vmem>>, %arg2: memref<768x128xbf16, #tpu.memory_space<vmem>>, %arg3: memref<1x128xf32, #tpu.memory_space<vmem>>, %arg4: memref<32x128xbf16, #tpu.memory_space<vmem>>) attributes {dimension_semantics = [#tpu.dimension_semantics<parallel>], iteration_bounds = array<i64: 1>, scalar_prefetch = 0 : i64, scratch_operands = 0 : i64, tpu.core_type = #tpu.core_type<tc>, window_params = [{transform_indices = @transform_0, window_bounds = array<i64: 32, 768>}, {pipeline_mode = #tpu.pipeline_mode<synchronous>, transform_indices = @transform_1, window_bounds = array<i64: 768, 128>}, {pipeline_mode = #tpu.pipeline_mode<synchronous>, transform_indices = @transform_2, window_bounds = array<i64: 1, 128>}, {transform_indices = @transform_3, window_bounds = array<i64: 32, 128>}]} {
    %c0 = arith.constant 0 : index
    %c0_0 = arith.constant 0 : index
    %0 = vector.load %arg1[%c0, %c0_0] : memref<32x768xbf16, #tpu.memory_space<vmem>>, vector<32x768xbf16>
    %c0_1 = arith.constant 0 : index
    %c0_2 = arith.constant 0 : index
    %1 = vector.load %arg2[%c0_1, %c0_2] : memref<768x128xbf16, #tpu.memory_space<vmem>>, vector<768x128xbf16>
    %cst = arith.constant dense<0.000000e+00> : vector<32x128xf32>
    %2 = tpu.matmul %0, %1, %cst {dimension_numbers = #tpu.dot_dimension_numbers<[1], [0], [0], [1], [0, 0, 1, 1], [], []>} : vector<32x768xbf16>, vector<768x128xbf16>, vector<32x128xf32> -> vector<32x128xf32>
    %c0_3 = arith.constant 0 : index
    %c0_4 = arith.constant 0 : index
    %3 = vector.load %arg3[%c0_3, %c0_4] : memref<1x128xf32, #tpu.memory_space<vmem>>, vector<1x128xf32>
    %4 = vector.broadcast %3 : vector<1x128xf32> to vector<32x128xf32>
    %5 = arith.addf %2, %4 : vector<32x128xf32>
    %6 = arith.truncf %5 : vector<32x128xf32> to vector<32x128xbf16>
    %c0_5 = arith.constant 0 : index
    %c0_6 = arith.constant 0 : index
    %7 = vector.load %arg4[%c0_5, %c0_6] : memref<32x128xbf16, #tpu.memory_space<vmem>>, vector<32x128xbf16>
    tpu.vector_store %arg4[%c0_5, %c0_6], %6 {strides = array<i32>} : memref<32x128xbf16, #tpu.memory_space<vmem>>, vector<32x128xbf16>,
    return
  }
  func.func @transform_0(%arg0: i32) -> (i32, i32) {
    %c0_i32 = arith.constant 0 : i32
    %c0_i32_0 = arith.constant 0 : i32
    return %arg0, %c0_i32 : i32, i32
  }
  func.func @transform_1(%arg0: i32) -> (i32, i32) {
    %c0_i32 = arith.constant 0 : i32
    %c0_i32_0 = arith.constant 0 : i32
    %c0_i32_1 = arith.constant 0 : i32
    return %c0_i32, %c0_i32_0 : i32, i32
  }
  func.func @transform_2(%arg0: i32) -> (i32, i32) {
    %c0_i32 = arith.constant 0 : i32
    %c0_i32_0 = arith.constant 0 : i32
    %c0_i32_1 = arith.constant 0 : i32
    return %c0_i32, %c0_i32_0 : i32, i32
  }
  func.func @transform_3(%arg0: i32) -> (i32, i32) {
    %c0_i32 = arith.constant 0 : i32
    %c0_i32_0 = arith.constant 0 : i32
    return %arg0, %c0_i32 : i32, i32
  }
}

</mosaic_0001>

<bundles_post_ra>
// kernel: encoder_block_forward.1
= control target key start
LH: loop header
LB: loop body
LE: loop exit
PB: predicated region body
PF: predicated region fallthrough
CT: control target
= control target key end

     0   :  { %s1217_s0 = inlined_call_operand.vmem [shape: bf16[32,768], index: 0, kind: input, shape index: {}]   ;;  %s1218_s1 = inlined_call_operand.vmem [shape: bf16[768,128], index: 1, kind: input, shape index: {}]   ;;  %s1219_s2 = inlined_call_operand.vmem [shape: f32[1,128], index: 2, kind: input, shape index: {}]   ;;  %s1220_s3 = inlined_call_operand.hbm [shape: bf16[32,128], index: 3, kind: output, shape index: {}]  }
   0x1   :  { %v874_v0 = vld [vmem:[%s1218_s1 + $0x38] sm:$0xff]  ;;  %v873_v4 = vld [vmem:[%s1218_s1 + $0x30] sm:$0xff]  ;;  %v872_v8 = vld [vmem:[%s1218_s1 + $0x28] sm:$0xff] }
   0x2   :  { %v882_v1 = vld [vmem:[%s1218_s1 + $0x78] sm:$0xff]  ;;  %475 = vmatpush.bf16.msra.mxu0 %v874_v0  ;;  %v881_v5 = vld [vmem:[%s1218_s1 + $0x70] sm:$0xff]  ;;  %v880_v9 = vld [vmem:[%s1218_s1 + $0x68] sm:$0xff] }
   0x3   :  { %v890_v2 = vld [vmem:[%s1218_s1 + $0xb8] sm:$0xff]  ;;  %494 = vmatpush.bf16.msra.mxu1 %v882_v1  ;;  %v889_v6 = vld [vmem:[%s1218_s1 + $0xb0] sm:$0xff]  ;;  %v888_v10 = vld [vmem:[%s1218_s1 + $0xa8] sm:$0xff] }
   0x4   :  { %v898_v3 = vld [vmem:[%s1218_s1 + $0xf8] sm:$0xff]  ;;  %513 = vmatpush.bf16.msra.mxu2 %v890_v2  ;;  %v897_v7 = vld [vmem:[%s1218_s1 + $0xf0] sm:$0xff]  ;;  %v896_v11 = vld [vmem:[%s1218_s1 + $0xe8] sm:$0xff] }
   0x5   :  { %532 = vmatpush.bf16.msra.mxu3 %v898_v3  ;;  %v871_v12 = vld [vmem:[%s1218_s1 + $0x20] sm:$0xff]  ;;  %v870_v16 = vld [vmem:[%s1218_s1 + $0x18] sm:$0xff]  ;;  %v869_v20 = vld [vmem:[%s1218_s1 + $0x10] sm:$0xff] }
   0x6   :  { %476 = vmatpush.bf16.msra.mxu0 %v873_v4  ;;  %v879_v13 = vld [vmem:[%s1218_s1 + $0x60] sm:$0xff]  ;;  %v878_v17 = vld [vmem:[%s1218_s1 + $0x58] sm:$0xff]  ;;  %v877_v21 = vld [vmem:[%s1218_s1 + $0x50] sm:$0xff] }
   0x7   :  { %495 = vmatpush.bf16.msra.mxu1 %v881_v5  ;;  %v887_v14 = vld [vmem:[%s1218_s1 + $0xa0] sm:$0xff]  ;;  %v886_v18 = vld [vmem:[%s1218_s1 + $0x98] sm:$0xff]  ;;  %v885_v22 = vld [vmem:[%s1218_s1 + $0x90] sm:$0xff] }
   0x8   :  { %514 = vmatpush.bf16.msra.mxu2 %v889_v6  ;;  %v895_v15 = vld [vmem:[%s1218_s1 + $0xe0] sm:$0xff]  ;;  %v894_v19 = vld [vmem:[%s1218_s1 + $0xd8] sm:$0xff]  ;;  %v893_v23 = vld [vmem:[%s1218_s1 + $0xd0] sm:$0xff] }
   0x9   :  { %533 = vmatpush.bf16.msra.mxu3 %v897_v7 }
   0xa   :  { %477 = vmatpush.bf16.msra.mxu0 %v872_v8 }
   0xb   :  { %496 = vmatpush.bf16.msra.mxu1 %v880_v9 }
   0xc   :  { %515 = vmatpush.bf16.msra.mxu2 %v888_v10 }
   0xd   :  { %534 = vmatpush.bf16.msra.mxu3 %v896_v11 }
   0xe   :  { %478 = vmatpush.bf16.msra.mxu0 %v871_v12 }
   0xf   :  { %497 = vmatpush.bf16.msra.mxu1 %v879_v13 }
  0x10   :  { %516 = vmatpush.bf16.msra.mxu2 %v887_v14 }
  0x11   :  { %535 = vmatpush.bf16.msra.mxu3 %v895_v15 }
  0x12   :  { %479 = vmatpush.bf16.msra.mxu0 %v870_v16 }
  0x13   :  { %498 = vmatpush.bf16.msra.mxu1 %v878_v17 }
  0x14   :  { %517 = vmatpush.bf16.msra.mxu2 %v886_v18 }
  0x15   :  { %536 = vmatpush.bf16.msra.mxu3 %v894_v19 }
  0x16   :  { %8 = vsyncpa [#allocation3], 0  ;;  %480 = vmatpush.bf16.msra.mxu0 %v869_v20  ;;  %v868_v24 = vld [vmem:[%s1218_s1 + $0x8] sm:$0xff]  ;;  %v867_v28 = vld [vmem:[%s1218_s1] sm:$0xff]  ;;  %s603_s24 = sshll.u32 %s1220_s3, 4  ;;  %s973_s25 = smov 64   ;;  %s604_s24 = int_to_ptr.hbm [resolvable:$true] %s603_s24 }
  0x17   :  { %499 = vmatpush.bf16.msra.mxu1 %v877_v21  ;;  %v876_v25 = vld [vmem:[%s1218_s1 + $0x48] sm:$0xff]  ;;  %v875_v29 = vld [vmem:[%s1218_s1 + $0x40] sm:$0xff]  ;;  %v858_v33 = vld [vmem:[%s1217_s0 + $0x14] sm:$0xf0]  ;;  %s974_s26 = smov 4  }
  0x18   :  { %518 = vmatpush.bf16.msra.mxu2 %v885_v22  ;;  %v884_v26 = vld [vmem:[%s1218_s1 + $0x88] sm:$0xff]  ;;  %v883_v30 = vld [vmem:[%s1218_s1 + $0x80] sm:$0xff]  ;;  %v619_v35 = vld [vmem:[%s1217_s0 + $0x18] sm:$0xf0] }
  0x19   :  { %537 = vmatpush.bf16.msra.mxu3 %v893_v23  ;;  %v892_v27 = vld [vmem:[%s1218_s1 + $0xc8] sm:$0xff]  ;;  %v891_v31 = vld [vmem:[%s1218_s1 + $0xc0] sm:$0xff]  ;;  %v906_v40 = vld [vmem:[%s1218_s1 + $0x138] sm:$0xff] }
  0x1a   :  { %v617_v32 = vld [vmem:[%s1217_s0] sm:$0xf]  ;;  %481 = vmatpush.bf16.msra.mxu0 %v868_v24  ;;  %v855_v34 = vld [vmem:[%s1217_s0 + $0x4] sm:$0xf]  ;;  %v625_v36 = vld [vmem:[%s1217_s0 + $0x8] sm:$0xf] }
  0x1b   :  { %500 = vmatpush.bf16.msra.mxu1 %v876_v25  ;;  %v859_v37 = vld [vmem:[%s1217_s0 + $0x1c] sm:$0xf0]  ;;  %v856_v38 = vld [vmem:[%s1217_s0 + $0xc] sm:$0xf]  ;;  %v627_v39 = vld [vmem:[%s1217_s0 + $0x20] sm:$0xf0]  ;;  %v618_v41 = vor.u32 %v858_v33, %v617_v32  ;;  %v622_v42 = vor.u32 %v855_v34, %v619_v35 }
  0x1c   :  { %519 = vmatpush.bf16.msra.mxu2 %v884_v26  ;;  %v626_v43 = vor.u32 %v859_v37, %v625_v36  ;;  %v630_v44 = vor.u32 %v856_v38, %v627_v39  ;;  %v914_v45 = vld [vmem:[%s1218_s1 + $0x178] sm:$0xff]  ;;  %v905_v46 = vld [vmem:[%s1218_s1 + $0x130] sm:$0xff]  ;;  %v904_v48 = vld [vmem:[%s1218_s1 + $0x128] sm:$0xff] }
  0x1d   :  { %538 = vmatpush.bf16.msra.mxu3 %v892_v27  ;;  %v913_v47 = vld [vmem:[%s1218_s1 + $0x170] sm:$0xff]  ;;  %v912_v49 = vld [vmem:[%s1218_s1 + $0x168] sm:$0xff]  ;;  %v903_v50 = vld [vmem:[%s1218_s1 + $0x120] sm:$0xff] }
  0x1e   :  { %482 = vmatpush.bf16.msra.mxu0 %v867_v28  ;;  %v911_v51 = vld [vmem:[%s1218_s1 + $0x160] sm:$0xff]  ;;  %v641_v52 = vld [vmem:[%s1217_s0 + $0x30] sm:$0xf]  ;;  %v864_v53 = vld [vmem:[%s1217_s0 + $0x44] sm:$0xf0] }
  0x1f   :  { %501 = vmatpush.bf16.msra.mxu1 %v875_v29  ;;  %v861_v54 = vld [vmem:[%s1217_s0 + $0x34] sm:$0xf]  ;;  %v643_v55 = vld [vmem:[%s1217_s0 + $0x48] sm:$0xf0]  ;;  %v649_v56 = vld [vmem:[%s1217_s0 + $0x38] sm:$0xf]  ;;  %v642_v61 = vor.u32 %v864_v53, %v641_v52 }
  0x20   :  { %520 = vmatpush.bf16.msra.mxu2 %v883_v30  ;;  %v865_v57 = vld [vmem:[%s1217_s0 + $0x4c] sm:$0xf0]  ;;  %v862_v58 = vld [vmem:[%s1217_s0 + $0x3c] sm:$0xf]  ;;  %v651_v59 = vld [vmem:[%s1217_s0 + $0x50] sm:$0xf0]  ;;  %v646_v62 = vor.u32 %v861_v54, %v643_v55 }
  0x21   :  { %539 = vmatpush.bf16.msra.mxu3 %v891_v31  ;;  %483 = vmatmul.bf16.vlgmr.msra.gmra.mxu0 %v618_v41  ;;  %v902_v60 = vld [vmem:[%s1218_s1 + $0x118] sm:$0xff]  ;;  %v650_v63 = vor.u32 %v865_v57, %v649_v56  ;;  %v654_v0 = vor.u32 %v862_v58, %v651_v59  ;;  %v901_v2 = vld [vmem:[%s1218_s1 + $0x110] sm:$0xff]  ;;  %v900_v4 = vld [vmem:[%s1218_s1 + $0x108] sm:$0xff] }
  0x22   :  { %551 = vmatpush.bf16.msrb.mxu0 %v906_v40  ;;  %502 = vmatmul.bf16.vlgmr.msra.gmra.mxu1 %v622_v42  ;;  %v910_v1 = vld [vmem:[%s1218_s1 + $0x158] sm:$0xff]  ;;  %v909_v3 = vld [vmem:[%s1218_s1 + $0x150] sm:$0xff]  ;;  %v908_v5 = vld [vmem:[%s1218_s1 + $0x148] sm:$0xff] }
  0x23   :  { %521 = vmatmul.bf16.vlgmr.msra.gmra.mxu2 %v626_v43  ;;  %570 = vmatpush.bf16.msrb.mxu1 %v914_v45  ;;  %v899_v6 = vld [vmem:[%s1218_s1 + $0x100] sm:$0xff]  ;;  %v633_v8 = vld [vmem:[%s1217_s0 + $0x10] sm:$0xf]  ;;  %v860_v9 = vld [vmem:[%s1217_s0 + $0x24] sm:$0xf0] }
  0x24   :  { %926 = vmatpush.bf16.msrb.mxu2 %v906_v40  ;;  %540 = vmatmul.bf16.vlgmr.msra.gmra.mxu3 %v630_v44  ;;  %v907_v7 = vld [vmem:[%s1218_s1 + $0x140] sm:$0xff]  ;;  %v866_v11 = vld [vmem:[%s1217_s0 + $0x54] sm:$0xf0]  ;;  %v857_v12 = vld [vmem:[%s1217_s0 + $0x14] sm:$0xf]  ;;  %v634_v16 = vor.u32 %v860_v9, %v633_v8 }
  0x25   :  { %934 = vmatpush.bf16.msrb.mxu3 %v914_v45  ;;  %v657_v10 = vld [vmem:[%s1217_s0 + $0x40] sm:$0xf]  ;;  %v635_v13 = vld [vmem:[%s1217_s0 + $0x28] sm:$0xf0]  ;;  %v863_v14 = vld [vmem:[%s1217_s0 + $0x44] sm:$0xf] }
  0x26   :  { %552 = vmatpush.bf16.msrb.mxu0 %v905_v46  ;;  %v659_v15 = vld [vmem:[%s1217_s0 + $0x58] sm:$0xf0]  ;;  %v658_v17 = vor.u32 %v866_v11, %v657_v10  ;;  %v638_v18 = vor.u32 %v857_v12, %v635_v13  ;;  %v945_v30 = vld [vmem:[%s1219_s2] ss:$0 sm:$0xff]  ;;  %s972_s2 = smov [#allocation2]  }
  0x27   :  { %571 = vmatpush.bf16.msrb.mxu1 %v913_v47  ;;  %v662_v19 = vor.u32 %v863_v14, %v659_v15  ;;  %s601_s21 = sshll.u32 %s972_s2, 4  ;;  %s602_s21 = int_to_ptr.vmem [resolvable:$true] %s601_s21 }
  0x28   :  { %927 = vmatpush.bf16.msrb.mxu2 %v905_v46 }
  0x29   :  { %935 = vmatpush.bf16.msrb.mxu3 %v913_v47 }
  0x2a   :  { %553 = vmatpush.bf16.msrb.mxu0 %v904_v48 }
  0x2b   :  { %572 = vmatpush.bf16.msrb.mxu1 %v912_v49 }
  0x2c   :  { %928 = vmatpush.bf16.msrb.mxu2 %v904_v48 }
  0x2d   :  { %936 = vmatpush.bf16.msrb.mxu3 %v912_v49 }
  0x2e   :  { %554 = vmatpush.bf16.msrb.mxu0 %v903_v50 }
  0x2f   :  { %573 = vmatpush.bf16.msrb.mxu1 %v911_v51 }
  0x30   :  { %929 = vmatpush.bf16.msrb.mxu2 %v903_v50 }
  0x31   :  { %937 = vmatpush.bf16.msrb.mxu3 %v911_v51  ;;  %488 = vmatmul.bf16.gmra.mxu0 %v642_v61 }
  0x32   :  { %555 = vmatpush.bf16.msrb.mxu0 %v902_v60  ;;  %507 = vmatmul.bf16.gmra.mxu1 %v646_v62 }
  0x33   :  { %526 = vmatmul.bf16.gmra.mxu2 %v650_v63  ;;  %574 = vmatpush.bf16.msrb.mxu1 %v910_v1 }
  0x34   :  { %930 = vmatpush.bf16.msrb.mxu2 %v902_v60  ;;  %545 = vmatmul.bf16.gmra.mxu3 %v654_v0 }
  0x35   :  { %938 = vmatpush.bf16.msrb.mxu3 %v910_v1 }
  0x36   :  { %556 = vmatpush.bf16.msrb.mxu0 %v901_v2 }
  0x37   :  { %575 = vmatpush.bf16.msrb.mxu1 %v909_v3 }
  0x38   :  { %931 = vmatpush.bf16.msrb.mxu2 %v901_v2 }
  0x39   :  { %939 = vmatpush.bf16.msrb.mxu3 %v909_v3 }
  0x3a   :  { %557 = vmatpush.bf16.msrb.mxu0 %v900_v4 }
  0x3b   :  { %576 = vmatpush.bf16.msrb.mxu1 %v908_v5 }
  0x3c   :  { %932 = vmatpush.bf16.msrb.mxu2 %v900_v4 }
  0x3d   :  { %940 = vmatpush.bf16.msrb.mxu3 %v908_v5 }
  0x3e   :  { %558 = vmatpush.bf16.msrb.mxu0 %v899_v6 }
  0x3f   :  { %577 = vmatpush.bf16.msrb.mxu1 %v907_v7 }
  0x40   :  { %933 = vmatpush.bf16.msrb.mxu2 %v899_v6 }
  0x41   :  { %941 = vmatpush.bf16.msrb.mxu3 %v907_v7  ;;  %559 = vmatmul.bf16.vlgmr.msrb.gmra.mxu0 %v634_v16 }
  0x42   :  { %578 = vmatmul.bf16.vlgmr.msrb.gmra.mxu1 %v638_v18 }
  0x43   :  { %564 = vmatmul.bf16.vlgmr.msrb.gmra.mxu2 %v658_v17 }
  0x44   :  { %583 = vmatmul.bf16.vlgmr.msrb.gmra.mxu3 %v662_v19 }
  0x9e   :  { %v484_v20 = vpop.f32.mrf.mxu0 }
  0x9f   :  { %v503_v21 = vpop.f32.mrf.mxu1  ;;  %v485_v35 = vadd.f32 %v945_v30, %v484_v20 }
  0xa1   :  { %v504_v36 = vadd.f32 %v503_v21, %v485_v35 }
  0xa6   :  { %v522_v22 = vpop.f32.mrf.mxu2  ;;  %v486_v24 = vpop.f32.mrf.mxu0 }
  0xa7   :  { %v541_v23 = vpop.f32.mrf.mxu3  ;;  %v505_v25 = vpop.f32.mrf.mxu1  ;;  %v487_v37 = vadd.f32 %v945_v30, %v486_v24  ;;  %v523_v42 = vadd.f32 %v522_v22, %v504_v36 }
  0xa9   :  { %v506_v43 = vadd.f32 %v505_v25, %v487_v37  ;;  %v542_v48 = vadd.f32 %v541_v23, %v523_v42 }
  0xae   :  { %v524_v26 = vpop.f32.mrf.mxu2  ;;  %v489_v28 = vpop.f32.mrf.mxu0 }
  0xaf   :  { %v543_v27 = vpop.f32.mrf.mxu3  ;;  %v508_v29 = vpop.f32.mrf.mxu1  ;;  %v490_v40 = vadd.f32 %v945_v30, %v489_v28  ;;  %v525_v45 = vadd.f32 %v524_v26, %v506_v43 }
  0xb1   :  { %v509_v46 = vadd.f32 %v508_v29, %v490_v40  ;;  %v544_v49 = vadd.f32 %v543_v27, %v525_v45 }
  0xb6   :  { %v527_v31 = vpop.f32.mrf.mxu2  ;;  %v491_v33 = vpop.f32.mrf.mxu0 }
  0xb7   :  { %v546_v32 = vpop.f32.mrf.mxu3  ;;  %v510_v34 = vpop.f32.mrf.mxu1  ;;  %v492_v47 = vadd.f32 %v945_v30, %v491_v33  ;;  %v528_v52 = vadd.f32 %v527_v31, %v509_v46 }
  0xb9   :  { %v511_v53 = vadd.f32 %v510_v34, %v492_v47  ;;  %v547_v61 = vadd.f32 %v546_v32, %v528_v52 }
  0xbe   :  { %v529_v38 = vpop.f32.mrf.mxu2  ;;  %v560_v41 = vpop.f32.mrf.mxu0 }
  0xbf   :  { %v548_v39 = vpop.f32.mrf.mxu3  ;;  %v579_v44 = vpop.f32.mrf.mxu1  ;;  %v561_v50 = vadd.f32 %v560_v41, %v542_v48  ;;  %v530_v57 = vadd.f32 %v529_v38, %v511_v53 }
  0xc1   :  { %v580_v59 = vadd.f32 %v579_v44, %v561_v50  ;;  %v549_v63 = vadd.f32 %v548_v39, %v530_v57 }
  0xc6   :  { %v565_v51 = vpop.f32.mrf.mxu2  ;;  %v562_v55 = vpop.f32.mrf.mxu0 }
  0xc7   :  { %v584_v54 = vpop.f32.mrf.mxu3  ;;  %v563_v56 = vadd.f32 %v562_v55, %v544_v49  ;;  %v581_v58 = vpop.f32.mrf.mxu1  ;;  %v566_v0 = vadd.f32 %v565_v51, %v547_v61 }
  0xc9   :  { %v582_v60 = vadd.f32 %v581_v58, %v563_v56  ;;  %v585_v4 = vadd.f32 %v584_v54, %v566_v0 }
  0xcb   :  { %v918_v62 = vpack.c.bf16 %v582_v60, %v580_v59 }
  0xcd   :  { %919 = vst [vmem:[#allocation2] sm:$0xff] %v918_v62  }
  0xce   :  { %v567_v1 = vpop.f32.mrf.mxu2 }
  0xcf   :  { %v568_v2 = vadd.f32 %v567_v1, %v549_v63  ;;  %v586_v3 = vpop.f32.mrf.mxu3 }
  0xd1   :  { %v587_v5 = vadd.f32 %v586_v3, %v568_v2 }
  0xd3   :  { %v923_v6 = vpack.c.bf16 %v587_v5, %v585_v4 }
  0xd5   :  { %925 = vst [vmem:[#allocation2 + $0x8] sm:$0xff] %v923_v6  }
  0xd6   :  { %609 = dma.vmem_to_hbm [thread:$0]  %s602_s21, 256, %s604_s24, [#allocation3], %s973_s25, %s973_s25, %s974_s26  }
  0xd7   :  { %970 = dma.done.wait [#allocation3], 256  }
  0xd8   :  { %971 = vsyncadd [#allocation3], 4294967040 }
  0xd9   :  { %614 = vsyncpa [#allocation3], 1 }

</bundles_post_ra>
